<compile_context>
chip_gen: v7x
topology: tpu7x:2x2x1
jax: 0.10.0
libtpu: 0.0.40
codegen_flags: <defaults>
</compile_context>

<pallas_src>
import math
import numpy as np
import jax
import jax.numpy as jnp
from jax import lax
from jax.experimental import pallas as pl
from jax.experimental.pallas import tpu as pltpu

K_SCALE = math.sqrt(6.0)     # self.k
RES_SCALE = 0.1              # self.res_scale
NORM_EPS = 5e-5              # F.normalize eps
SM_EPS = 1e-4                # softmax_kernel eps
VMEM_LIMIT = 48 * 1024 * 1024  # <= v7x physical (64 MiB); ample on v5e/v6e (128 MiB)


def _round_up(x, m):
    return ((x + m - 1) // m) * m


def _make_phase1_kernel(C, hw, tile, needs_mask, mxu_dtype):
    """Phase 1: accumulate ctx_aug = [context ; k_cumsum] (C+1, M) over spatial tiles.

    x_ref:    (1, C, T)       input tile (channels on sublanes, spatial on lanes)
    wf_ref:   (C+Cr, C)       fused [conv_assembly ; conv_match2] 1x1 weights (mxu dtype)
    bf_ref:   (C+Cr, 1)       fused biases (f32)
    proj_ref: (M, Cr)         Performer projection matrix (mxu dtype)
    ctx_ref:  (1, C+1, M)     fused accumulator, resident across the tile axis (f32)
    """
    def kernel(x_ref, wf_ref, bf_ref, proj_ref, ctx_ref):
        t = pl.program_id(1)
        x = x_ref[0]                                                    # (C, T) f32
        if needs_mask:
            pos = t * tile + lax.broadcasted_iota(jnp.int32, (1, tile), 1)
            lane_ok = pos < hw                                          # (1, T)
            x = jnp.where(lane_ok, x, 0.0)                              # no garbage feeds MXU

        # Fused 1x1 convs: one MXU pass produces both conv_assembly and conv_match2.
        y = jnp.dot(wf_ref[...], x.astype(mxu_dtype),
                    preferred_element_type=jnp.float32) + bf_ref[...]   # (C+Cr, T)
        va = y[:C]                                                      # (C, T)
        e2 = y[C:]                                                      # (Cr, T)

        # F.normalize(dim=channel) * sqrt(6); dk reuses the norm (no second reduce).
        n2 = jnp.sqrt(jnp.sum(e2 * e2, axis=0, keepdims=True))          # (1, T) sublane reduce
        r2 = K_SCALE / jnp.maximum(n2, NORM_EPS)
        e2 = e2 * r2
        dk = 0.5 * jnp.square(n2 * r2)                                   # = 0.5*||e2_norm||^2

        # Performer softmax_kernel feature map (ratio dropped: cancels in num/den).
        kd = jnp.dot(proj_ref[...], e2.astype(mxu_dtype),
                     preferred_element_type=jnp.float32)                 # (M, T)
        kp = jnp.exp(kd - dk) + SM_EPS
        if needs_mask:
            kp = jnp.where(lane_ok, kp, 0.0)                             # ragged tail contributes 0

        # Single matmul: context (C rows) + k_cumsum (ones row) in one MXU pass.
        va_aug = jnp.concatenate(
            [va.astype(mxu_dtype), jnp.ones((1, tile), mxu_dtype)], axis=0)   # (C+1, T)
        ctx_tile = lax.dot_general(va_aug, kp.astype(mxu_dtype),
                                   (((1,), (1,)), ((), ())),
                                   preferred_element_type=jnp.float32)   # (C+1, M) lane-dense

        @pl.when(t == 0)
        def _init():
            ctx_ref[0] = ctx_tile

        @pl.when(t > 0)
        def _acc():
            ctx_ref[0] += ctx_tile

    return kernel


def _make_phase2_kernel(C, hw, tile, needs_mask, mxu_dtype, approx_recip):
    """Phase 2: per spatial tile, qp feature map + attention output + residual.

    x_ref:    (1, C, T)     input tile
    w1_ref:   (Cr, C)       conv_match1 1x1 weight (mxu dtype);  b1_ref: (Cr, 1) f32
    proj_ref: (M, Cr)       Performer projection matrix (mxu dtype)
    ctx_ref:  (1, C+1, M)   fused [context ; k_cumsum] from phase 1 (f32)
    o_ref:    (1, C, T)     output tile (lane-dense store)
    """
    def kernel(x_ref, w1_ref, b1_ref, proj_ref, ctx_ref, o_ref):
        x = x_ref[0]                                                    # (C, T) f32
        if needs_mask:
            t = pl.program_id(1)
            pos = t * tile + lax.broadcasted_iota(jnp.int32, (1, tile), 1)
            x = jnp.where(pos < hw, x, 0.0)

        e1 = jnp.dot(w1_ref[...], x.astype(mxu_dtype),
                     preferred_element_type=jnp.float32) + b1_ref[...]  # (Cr, T)
        n1 = jnp.sqrt(jnp.sum(e1 * e1, axis=0, keepdims=True))          # (1, T)
        r1 = K_SCALE / jnp.maximum(n1, NORM_EPS)
        e1 = e1 * r1
        dq = 0.5 * jnp.square(n1 * r1)

        qd = jnp.dot(proj_ref[...], e1.astype(mxu_dtype),
                     preferred_element_type=jnp.float32)                # (M, T)
        qp = jnp.exp(qd - dq) + SM_EPS

        # Numerator (rows :C) and denominator (row C) from ONE MXU matmul.
        nd = jnp.dot(ctx_ref[0].astype(mxu_dtype), qp.astype(mxu_dtype),
                     preferred_element_type=jnp.float32)                # (C+1, T)
        num = nd[:C]                                                    # (C, T)
        den = nd[C:]                                                    # (1, T)

        scale = pl.reciprocal(den, approx=approx_recip) * RES_SCALE     # res_scale folded in
        o_ref[0] = num * scale + x

    return kernel


def enlca_forward(x_nchw, params, *, matmul_dtype=jnp.bfloat16, tile_cap=2048):
    """ENLCA forward (eval mode). Returns (out_nchw, loss=0.0)."""
    w1, b1, w2, b2, wa, ba, proj = params
    N, C, H, W = x_nchw.shape
    HW = H * W
    Cr = int(np.shape(w1)[0])
    M = int(np.shape(proj)[0])
    md = jnp.dtype(matmul_dtype)
    approx_recip = md != jnp.dtype(jnp.float32)

    # Spatial tiling: biggest lane-aligned tile up to tile_cap; ragged tail is masked
    # in-kernel (no wrapper-side pad/slice -> no extra HBM round-trip of x).
    tile = min(tile_cap, _round_up(HW, 128))
    num_t = pl.cdiv(HW, tile)
    needs_mask = (HW % tile) != 0

    x = x_nchw.reshape(N, C, HW).astype(jnp.float32)

    # Fused [conv_assembly ; conv_match2] weight (wa first: slice at row C stays
    # sublane-8-aligned whenever C % 8 == 0).  Biases stay f32 (added post-matmul).
    wf = jnp.concatenate([jnp.asarray(wa, jnp.float32).reshape(C, C),
                          jnp.asarray(w2, jnp.float32).reshape(Cr, C)], axis=0).astype(md)
    bf = jnp.concatenate([jnp.asarray(ba, jnp.float32).reshape(C, 1),
                          jnp.asarray(b2, jnp.float32).reshape(Cr, 1)], axis=0)
    w1m = jnp.asarray(w1, jnp.float32).reshape(Cr, C).astype(md)
    b1c = jnp.asarray(b1, jnp.float32).reshape(Cr, 1)
    projm = jnp.asarray(proj, jnp.float32).astype(md)                    # (M, Cr)

    # ---- Phase 1: accumulate ctx_aug = [context ; k_cumsum] over spatial tiles ----
    ctx = pl.pallas_call(
        _make_phase1_kernel(C, HW, tile, needs_mask, md),
        out_shape=jax.ShapeDtypeStruct((N, C + 1, M), jnp.float32),
        grid=(N, num_t),
        in_specs=[
            pl.BlockSpec((1, C, tile), lambda b, t: (b, 0, t)),
            pl.BlockSpec((C + Cr, C), lambda b, t: (0, 0)),
            pl.BlockSpec((C + Cr, 1), lambda b, t: (0, 0)),
            pl.BlockSpec((M, Cr), lambda b, t: (0, 0)),
        ],
        out_specs=pl.BlockSpec((1, C + 1, M), lambda b, t: (b, 0, 0)),
        compiler_params=pltpu.CompilerParams(
            dimension_semantics=("parallel", "arbitrary"),
            vmem_limit_bytes=VMEM_LIMIT),
    )(x, wf, bf, projm)

    # ---- Phase 2: query feature map + attention output + residual, fully parallel ----
    out = pl.pallas_call(
        _make_phase2_kernel(C, HW, tile, needs_mask, md, approx_recip),
        out_shape=jax.ShapeDtypeStruct((N, C, HW), jnp.float32),
        grid=(N, num_t),
        in_specs=[
            pl.BlockSpec((1, C, tile), lambda b, t: (b, 0, t)),
            pl.BlockSpec((Cr, C), lambda b, t: (0, 0)),
            pl.BlockSpec((Cr, 1), lambda b, t: (0, 0)),
            pl.BlockSpec((M, Cr), lambda b, t: (0, 0)),
            pl.BlockSpec((1, C + 1, M), lambda b, t: (b, 0, 0)),
        ],
        out_specs=pl.BlockSpec((1, C, tile), lambda b, t: (b, 0, t)),
        compiler_params=pltpu.CompilerParams(
            dimension_semantics=("parallel", "parallel"),
            vmem_limit_bytes=VMEM_LIMIT),
    )(x, w1m, b1c, projm, ctx)

    y = out.reshape(N, C, H, W)
    # TODO(synk): training-mode contrastive loss (torch.sort-based ranking statistic)
    # is not implemented; eval-mode forward returns loss = 0 like the PyTorch module.
    return y, jnp.float32(0.0)


def enlca_reference(x_nchw, params):
    """Pure-JAX f32 reference mirroring the PyTorch forward (eval mode)."""
    w1, b1, w2, b2, wa, ba, proj = params
    N, C, H, W = x_nchw.shape
    HW = H * W
    x = x_nchw.reshape(N, C, HW).astype(jnp.float32)                    # (N, C, HW)

    e1 = jnp.einsum('oc,nch->noh', w1, x) + b1[None, :, None]
    e2 = jnp.einsum('oc,nch->noh', w2, x) + b2[None, :, None]
    va = jnp.einsum('oc,nch->noh', wa, x) + ba[None, :, None]
    e1 = e1 / jnp.maximum(jnp.linalg.norm(e1, axis=1, keepdims=True), NORM_EPS) * K_SCALE
    e2 = e2 / jnp.maximum(jnp.linalg.norm(e2, axis=1, keepdims=True), NORM_EPS) * K_SCALE

    q = jnp.transpose(e1, (0, 2, 1))                                    # (N, HW, Cr)
    k = jnp.transpose(e2, (0, 2, 1))
    v = jnp.transpose(va, (0, 2, 1))                                    # (N, HW, C)

    ratio = proj.shape[0] ** -0.5
    qd = jnp.einsum('nid,jd->nij', q, proj)
    kd = jnp.einsum('nid,jd->nij', k, proj)
    qp = ratio * (jnp.exp(qd - 0.5 * jnp.sum(q * q, -1, keepdims=True)) + SM_EPS)
    kp = ratio * (jnp.exp(kd - 0.5 * jnp.sum(k * k, -1, keepdims=True)) + SM_EPS)

    k_cumsum = kp.sum(axis=1)                                           # (N, M)
    d_inv = 1.0 / jnp.einsum('nim,nm->ni', qp, k_cumsum)                # (N, HW)
    context = jnp.einsum('nim,nie->nme', kp, v)                         # (N, M, C)
    attn = jnp.einsum('nme,nim,ni->nie', context, qp, d_inv)            # (N, HW, C)

    y = jnp.transpose(attn, (0, 2, 1)) * RES_SCALE + x
    return y.reshape(N, C, H, W)


def gaussian_orthogonal_random_matrix(nb_rows, nb_cols, rng):
    """Deterministic re-implementation of the Performer projection init."""
    nb_full_blocks = nb_rows // nb_cols
    blocks = []
    for _ in range(nb_full_blocks):
        unstructured = rng.standard_normal((nb_cols, nb_cols))
        q, _ = np.linalg.qr(unstructured)
        blocks.append(q.T)
    rem = nb_rows - nb_full_blocks * nb_cols
    if rem > 0:
        unstructured = rng.standard_normal((nb_cols, nb_cols))
        q, _ = np.linalg.qr(unstructured)
        blocks.append(q.T[:rem])
    final = np.concatenate(blocks, axis=0)
    multiplier = np.linalg.norm(rng.standard_normal((nb_rows, nb_cols)), axis=1)
    return (np.diag(multiplier) @ final).astype(np.float32)


def make_params(channel, reduction, nb_features, key):
    cr = channel // reduction
    k1, k2, k3, k4, k5, k6 = jax.random.split(key, 6)
    s = 1.0 / math.sqrt(channel)
    # 1x1 conv weights stored torch-style as (Cout, Cin); biases as (Cout,).
    w1 = jax.random.uniform(k1, (cr, channel), jnp.float32, -s, s)
    b1 = jax.random.uniform(k2, (cr,), jnp.float32, -s, s)
    w2 = jax.random.uniform(k3, (cr, channel), jnp.float32, -s, s)
    b2 = jax.random.uniform(k4, (cr,), jnp.float32, -s, s)
    wa = jax.random.uniform(k5, (channel, channel), jnp.float32, -s, s)
    ba = jax.random.uniform(k6, (channel,), jnp.float32, -s, s)
    proj = jnp.asarray(
        gaussian_orthogonal_random_matrix(nb_features, cr, np.random.default_rng(0)))
    return (w1, b1, w2, b2, wa, ba, proj)


if __name__ == "__main__":
    # Small config consistent with the module: channel=8, reduction=2 -> dim_heads=4,
    # nb_features=128 (hard-coded in ENLCA), batch=2, spatial 16x16.
    N, C, H, W = 2, 8, 16, 16
    reduction = 2
    nb_features = 128

    key = jax.random.PRNGKey(0)
    kx, kx2, kparam = jax.random.split(key, 3)
    x = jax.random.normal(kx, (N, C, H, W), jnp.float32)
    params = make_params(C, reduction, nb_features, kparam)
    ref = enlca_reference(x, params)

    # 1) Default bf16-MXU-operand path (the v5e/v6e/v7x recommendation); f32 accumulation.
    out_bf16, loss = enlca_forward(x, params)
    out_bf16 = jax.block_until_ready(out_bf16)
    np.testing.assert_allclose(np.asarray(out_bf16), np.asarray(ref), rtol=2e-2, atol=2e-2)
    assert out_bf16.shape == (N, C, H, W)

    # 2) Full-f32 path: tight agreement with the PyTorch-equivalent f32 reference.
    out_f32, _ = enlca_forward(x, params, matmul_dtype=jnp.float32)
    out_f32 = jax.block_until_ready(out_f32)
    np.testing.assert_allclose(np.asarray(out_f32), np.asarray(ref), rtol=5e-4, atol=5e-4)

    # 3) Ragged spatial extent (HW=120 not a multiple of 128): exercises the no-pad
    #    in-kernel masking path and partial output-block writes.
    x2 = jax.random.normal(kx2, (1, C, 10, 12), jnp.float32)
    out2, _ = enlca_forward(x2, params, matmul_dtype=jnp.float32)
    out2 = jax.block_until_ready(out2)
    ref2 = enlca_reference(x2, params)
    np.testing.assert_allclose(np.asarray(out2), np.asarray(ref2), rtol=5e-4, atol=5e-4)

    print("KERNEL_OK")
</pallas_src>

<mosaic_0001>
module attributes {stable_mosaic.version = 11 : i64} {
  func.func @kernel(%arg0: i32, %arg1: i32, %arg2: memref<1x8x256xf32, #tpu.memory_space<vmem>>, %arg3: memref<12x8xbf16, #tpu.memory_space<vmem>>, %arg4: memref<12x1xf32, #tpu.memory_space<vmem>>, %arg5: memref<128x4xbf16, #tpu.memory_space<vmem>>, %arg6: memref<1x9x128xf32, #tpu.memory_space<vmem>>) attributes {dimension_semantics = [#tpu.dimension_semantics<parallel>, #tpu.dimension_semantics<arbitrary>], iteration_bounds = array<i64: 2, 1>, scalar_prefetch = 0 : i64, scratch_operands = 0 : i64, tpu.core_type = #tpu.core_type<tc>, window_params = [{transform_indices = @transform_0, window_bounds = array<i64: 1, 8, 256>}, {pipeline_mode = #tpu.pipeline_mode<synchronous>, transform_indices = @transform_1, window_bounds = array<i64: 12, 8>}, {pipeline_mode = #tpu.pipeline_mode<synchronous>, transform_indices = @transform_2, window_bounds = array<i64: 12, 1>}, {pipeline_mode = #tpu.pipeline_mode<synchronous>, transform_indices = @transform_3, window_bounds = array<i64: 128, 4>}, {transform_indices = @transform_4, window_bounds = array<i64: 1, 9, 128>}]} {
    %c0 = arith.constant 0 : index
    %c0_0 = arith.constant 0 : index
    %c0_1 = arith.constant 0 : index
    %0 = vector.load %arg2[%c0, %c0_0, %c0_1] : memref<1x8x256xf32, #tpu.memory_space<vmem>>, vector<1x8x256xf32>
    %1 = vector.shape_cast %0 : vector<1x8x256xf32> to vector<8x256xf32>
    %c0_2 = arith.constant 0 : index
    %c0_3 = arith.constant 0 : index
    %2 = vector.load %arg3[%c0_2, %c0_3] : memref<12x8xbf16, #tpu.memory_space<vmem>>, vector<12x8xbf16>
    %3 = arith.truncf %1 : vector<8x256xf32> to vector<8x256xbf16>
    %cst = arith.constant dense<0.000000e+00> : vector<12x256xf32>
    %4 = tpu.matmul %2, %3, %cst {dimension_numbers = #tpu.dot_dimension_numbers<[1], [0], [0], [1], [0, 0, 1, 1], [], []>} : vector<12x8xbf16>, vector<8x256xbf16>, vector<12x256xf32> -> vector<12x256xf32>
    %c0_4 = arith.constant 0 : index
    %c0_5 = arith.constant 0 : index
    %5 = vector.load %arg4[%c0_4, %c0_5] : memref<12x1xf32, #tpu.memory_space<vmem>>, vector<12x1xf32>
    %6 = vector.broadcast %5 : vector<12x1xf32> to vector<12x256xf32>
    %7 = arith.addf %4, %6 : vector<12x256xf32>
    %8 = vector.extract_strided_slice %7 {offsets = [0, 0], sizes = [8, 256], strides = [1, 1]} : vector<12x256xf32> to vector<8x256xf32>
    %9 = vector.extract_strided_slice %7 {offsets = [8, 0], sizes = [4, 256], strides = [1, 1]} : vector<12x256xf32> to vector<4x256xf32>
    %10 = arith.mulf %9, %9 : vector<4x256xf32>
    %cst_6 = arith.constant dense<0.000000e+00> : vector<256xf32>
    %11 = vector.multi_reduction <add>, %10, %cst_6 [0] : vector<4x256xf32> to vector<256xf32>
    %12 = vector.shape_cast %11 : vector<256xf32> to vector<1x256xf32>
    %13 = math.sqrt %12 : vector<1x256xf32>
    %cst_7 = arith.constant 5.000000e-05 : f32
    %14 = vector.broadcast %cst_7 : f32 to vector<1x256xf32>
    %15 = arith.maximumf %13, %14 : vector<1x256xf32>
    %cst_8 = arith.constant 2.44948983 : f32
    %16 = vector.broadcast %cst_8 : f32 to vector<1x256xf32>
    %17 = arith.divf %16, %15 : vector<1x256xf32>
    %18 = vector.broadcast %17 : vector<1x256xf32> to vector<4x256xf32>
    %19 = arith.mulf %9, %18 : vector<4x256xf32>
    %20 = arith.mulf %13, %17 : vector<1x256xf32>
    %21 = arith.mulf %20, %20 : vector<1x256xf32>
    %cst_9 = arith.constant 5.000000e-01 : f32
    %22 = vector.broadcast %cst_9 : f32 to vector<1x256xf32>
    %23 = arith.mulf %22, %21 : vector<1x256xf32>
    %c0_10 = arith.constant 0 : index
    %c0_11 = arith.constant 0 : index
    %24 = vector.load %arg5[%c0_10, %c0_11] : memref<128x4xbf16, #tpu.memory_space<vmem>>, vector<128x4xbf16>
    %25 = arith.truncf %19 : vector<4x256xf32> to vector<4x256xbf16>
    %cst_12 = arith.constant dense<0.000000e+00> : vector<128x256xf32>
    %26 = tpu.matmul %24, %25, %cst_12 {dimension_numbers = #tpu.dot_dimension_numbers<[1], [0], [0], [1], [0, 0, 1, 1], [], []>} : vector<128x4xbf16>, vector<4x256xbf16>, vector<128x256xf32> -> vector<128x256xf32>
    %27 = vector.broadcast %23 : vector<1x256xf32> to vector<128x256xf32>
    %28 = arith.subf %26, %27 : vector<128x256xf32>
    %29 = math.exp %28 : vector<128x256xf32>
    %cst_13 = arith.constant 9.99999974E-5 : f32
    %30 = vector.broadcast %cst_13 : f32 to vector<128x256xf32>
    %31 = arith.addf %29, %30 : vector<128x256xf32>
    %32 = arith.truncf %8 : vector<8x256xf32> to vector<8x256xbf16>
    %cst_14 = arith.constant 1.000000e+00 : bf16
    %33 = vector.broadcast %cst_14 : bf16 to vector<1x256xbf16>
    %34 = tpu.concatenate %32, %33 in 0 : vector<8x256xbf16>, vector<1x256xbf16> -> vector<9x256xbf16>
    %35 = arith.truncf %31 : vector<128x256xf32> to vector<128x256xbf16>
    %cst_15 = arith.constant dense<0.000000e+00> : vector<9x128xf32>
    %36 = tpu.matmul %34, %35, %cst_15 {dimension_numbers = #tpu.dot_dimension_numbers<[1], [1], [0], [0], [0, 0, 1, 0], [], []>} : vector<9x256xbf16>, vector<128x256xbf16>, vector<9x128xf32> -> vector<9x128xf32>
    %c0_i32 = arith.constant 0 : i32
    %37 = arith.cmpi eq, %arg1, %c0_i32 : i32
    %38 = arith.extui %37 : i1 to i32
    %c0_i32_16 = arith.constant 0 : i32
    %39 = arith.cmpi ne, %38, %c0_i32_16 : i32
    scf.if %39 {
      %c0_19 = arith.constant 0 : index
      %c0_20 = arith.constant 0 : index
      %c0_21 = arith.constant 0 : index
      %43 = vector.load %arg6[%c0_19, %c0_20, %c0_21] : memref<1x9x128xf32, #tpu.memory_space<vmem>>, vector<1x9x128xf32>
      %44 = vector.shape_cast %43 : vector<1x9x128xf32> to vector<9x128xf32>
      %45 = vector.shape_cast %36 : vector<9x128xf32> to vector<1x9x128xf32>
      tpu.vector_store %arg6[%c0_19, %c0_20, %c0_21], %45 {strides = array<i32>} : memref<1x9x128xf32, #tpu.memory_space<vmem>>, vector<1x9x128xf32>,
    } else {
    }
    %c0_i32_17 = arith.constant 0 : i32
    %40 = arith.cmpi sgt, %arg1, %c0_i32_17 : i32
    %41 = arith.extui %40 : i1 to i32
    %c0_i32_18 = arith.constant 0 : i32
    %42 = arith.cmpi ne, %41, %c0_i32_18 : i32
    scf.if %42 {
      %c0_19 = arith.constant 0 : index
      %c0_20 = arith.constant 0 : index
      %c0_21 = arith.constant 0 : index
      %43 = vector.load %arg6[%c0_19, %c0_20, %c0_21] : memref<1x9x128xf32, #tpu.memory_space<vmem>>, vector<1x9x128xf32>
      %44 = vector.shape_cast %43 : vector<1x9x128xf32> to vector<9x128xf32>
      %45 = arith.addf %44, %36 : vector<9x128xf32>
      %c0_22 = arith.constant 0 : index
      %c0_23 = arith.constant 0 : index
      %c0_24 = arith.constant 0 : index
      %46 = vector.load %arg6[%c0_22, %c0_23, %c0_24] : memref<1x9x128xf32, #tpu.memory_space<vmem>>, vector<1x9x128xf32>
      %47 = vector.shape_cast %46 : vector<1x9x128xf32> to vector<9x128xf32>
      %48 = vector.shape_cast %45 : vector<9x128xf32> to vector<1x9x128xf32>
      tpu.vector_store %arg6[%c0_22, %c0_23, %c0_24], %48 {strides = array<i32>} : memref<1x9x128xf32, #tpu.memory_space<vmem>>, vector<1x9x128xf32>,
    } else {
    }
    return
  }
  func.func @transform_0(%arg0: i32, %arg1: i32) -> (i32, i32, i32) {
    %c0_i32 = arith.constant 0 : i32
    %c0_i32_0 = arith.constant 0 : i32
    return %arg0, %c0_i32, %arg1 : i32, i32, i32
  }
  func.func @transform_1(%arg0: i32, %arg1: i32) -> (i32, i32) {
    %c0_i32 = arith.constant 0 : i32
    %c0_i32_0 = arith.constant 0 : i32
    %c0_i32_1 = arith.constant 0 : i32
    return %c0_i32, %c0_i32_0 : i32, i32
  }
  func.func @transform_2(%arg0: i32, %arg1: i32) -> (i32, i32) {
    %c0_i32 = arith.constant 0 : i32
    %c0_i32_0 = arith.constant 0 : i32
    %c0_i32_1 = arith.constant 0 : i32
    return %c0_i32, %c0_i32_0 : i32, i32
  }
  func.func @transform_3(%arg0: i32, %arg1: i32) -> (i32, i32) {
    %c0_i32 = arith.constant 0 : i32
    %c0_i32_0 = arith.constant 0 : i32
    %c0_i32_1 = arith.constant 0 : i32
    return %c0_i32, %c0_i32_0 : i32, i32
  }
  func.func @transform_4(%arg0: i32, %arg1: i32) -> (i32, i32, i32) {
    %c0_i32 = arith.constant 0 : i32
    %c0_i32_0 = arith.constant 0 : i32
    %c0_i32_1 = arith.constant 0 : i32
    return %arg0, %c0_i32, %c0_i32_0 : i32, i32, i32
  }
}

</mosaic_0001>

<bundles_post_ra>
// kernel: tpu_custom_call.1
= control target key start
LH: loop header
LB: loop body
LE: loop exit
PB: predicated region body
PF: predicated region fallthrough
CT: control target
= control target key end

     0   :  { %s1021_s15 = smov 0   ;;  %s1023_s16 = smov 0   ;;  %s1158_s0 = inlined_call_operand.vmem [shape: f32[2,8,256], index: 0, kind: input, shape index: {}]   ;;  %s1159_s1 = inlined_call_operand.vmem [shape: bf16[12,8], index: 1, kind: input, shape index: {}]   ;;  %s1160_s2 = inlined_call_operand.vmem [shape: f32[12,1], index: 2, kind: input, shape index: {}]   ;;  %s1161_s3 = inlined_call_operand.vmem [shape: bf16[128,4], index: 3, kind: input, shape index: {}]   ;;  %s1162_s4 = inlined_call_operand.vmem [shape: f32[2,9,128], index: 4, kind: output, shape index: {}]  }
   0x1   :  { %s1025_s17 = smov 0  }
   0x2 LB: > { %s26_s18 = sadd.s32 1, %s989_s16  ;;  %p835_p0 = scmp.ge.s32.totalorder %s993_s17, 1  ;;  %s993_s17 = sphi %s1025_s17, %s14_s17   ;;  %s989_s16 = sphi %s1023_s16, %s1164_s16   ;;  %s985_s15 = sphi %s1021_s15, %s1163_s15  }
   0x3   : > { %p28_p1 = scmp.ge.s32.totalorder %s26_s18, 2  ;;  %p181_p2 = scmp.lt.s32.totalorder %s993_s17, 3 }
   0x5   : > { %s1166_s18 = smov (%p28_p1, %s26_s18), 0  ;;  %p182_p3 = pnand %p835_p0, %p181_p2 }
   0x6   : > { %p212_p4 = scmp.lt.s32.totalorder (!%p182_p3), %s985_s15, 1  ;;  %v995_v0 = vmov (!%p182_p3), 0   ;;  %v235_v1 = vld [vmem:[%s1160_s2 + $0x8] sm:$0xf] (!%p182_p3)  ;;  %v234_v2 = vld [vmem:[%s1160_s2] sm:$0xff] (!%p182_p3)  ;;  %vm255_vm0 = vcmask (!%p182_p3), 1043456  }
   0x7   : > { %185 = sbr.rel (%p182_p3) target bundleno = 807 (0x327), region = 36  ;;  %294 = vmatprep.mubr.bf16.mxu0 (!%p182_p3), %v995_v0  ;;  %889 = vset.pattern.permute.xlu0 (!%p182_p3), %v995_v0  ;;  %v890_v8 = vld [vmem:[%s1159_s1] sm:$0x3f] (!%p182_p3)   ;;  %vm251_vm1 = vcmask (!%p182_p3), 64512   ;;  %vm432_vm6 = vcmask (!%p182_p3), 1041408   ;;  %vm407_vm7 = vcmask (!%p182_p3), 31744  }
   0x8   : > { %243 = vperm.xlu0 (!%p182_p3), %889, %v235_v1   ;;  %471 = vmatprep.mubr.bf16.mxu1 (!%p182_p3), %v995_v0  ;;  %v891_v60 = vld [vmem:[%s1161_s3] sm:$0xff] (!%p182_p3)   ;;  %v892_v61 = vld [vmem:[%s1161_s3 + $0x8] sm:$0xff] (!%p182_p3)   ;;  %v893_v62 = vld [vmem:[%s1161_s3 + $0x10] sm:$0xff] (!%p182_p3)  }
   0x9   : > { %v894_v63 = vld [vmem:[%s1161_s3 + $0x18] sm:$0xff] (!%p182_p3)   ;;  %v895_v1 = vld [vmem:[%s1161_s3 + $0x20] sm:$0xff] (!%p182_p3)  }
   0xc   : > { %238 = vperm.xlu0 (!%p182_p3), %889, %v234_v2   ;;  %v896_v2 = vld [vmem:[%s1161_s3 + $0x28] sm:$0xff] (!%p182_p3)  }
   0xe   : > { %s1168_s15 = smov (!%p212_p4, %s985_s15), 1 }
   0xf   : > { %s862_s23 = sshll.u32 %s1168_s15, 4 }
  0x10   : > { %s219_s26 = scalar_lea.vmem %s1158_s0, %s862_s23 }
  0x11   : > { %v229_v3 = vld [vmem:[%s219_s26 + $0x8] sm:$0xff]  ;;  %v228_v4 = vld [vmem:[%s219_s26] sm:$0xff]  ;;  %s225_s26 = scalar_lea.vmem %s1162_s4, %s862_s23 }
  0x12   : > { %v233_v5 = vpack.c.bf16 %v229_v3, %v229_v3  ;;  %v232_v6 = vpack.c.bf16 %v228_v4, %v228_v4  ;;  %v897_v3 = vld [vmem:[%s1161_s3 + $0x30] sm:$0xff]   ;;  %v898_v4 = vld [vmem:[%s1161_s3 + $0x38] sm:$0xff]  }
  0x14   : > { %841 = vmatprep.subr.msk.bf16.mxu0 %vm255_vm0, %v233_v5  ;;  %v257_v7 = vsel %vm255_vm0, %v232_v6, 0 }
  0x15   : > { %263 = vmatpush1.bf16.msra.mxu0 %v257_v7 }
  0x18   : > { %842 = vmatmul.mubr.msk.bf16.vlgmr.msra.gmra.mrb[0].mxu0 %vm251_vm1, %v890_v8 }
  0x87   : > { %v244_v9 = vpop.permute.xlu0 %243 }
  0x8b   : > { %v239_v10 = vpop.permute.xlu0 %238 }
  0xeb   : > { %v296_v11 = vpop.f32.mrb[0].mxu0 }
  0xec   : > { %v1061_v12 = vadd.f32 %v296_v11, %v239_v10  ;;  %v298_v13 = vpop.f32.mrb[1].mxu0 }
  0xed   : > { %v299_v14 = vadd.f32 %v298_v13, %v239_v10  ;;  %v300_v15 = vpop.f32.mrb[2].mxu0 }
  0xee   : > { %v301_v16 = vadd.f32 %v300_v15, %v244_v9  ;;  %v302_v17 = vpop.f32.mrb[3].mxu0 }
  0xef   : > { %v681_v18 = vpack.c.bf16 %v299_v14, %v299_v14  ;;  %v303_v19 = vadd.f32 %v302_v17, %v244_v9 }
  0xf0   : > { %v305_v20 = vmul.f32 %v301_v16, %v301_v16 }
  0xf1   : > { %v306_v21 = vmul.f32 %v303_v19, %v303_v19  ;;  %v687_v22 = vsel %vm255_vm0, %v681_v18, 1065369472 }
  0xf2   : > { %v307_v23 = vsel %vm255_vm0, %v305_v20, 0.0  ;;  %737 = vmatprep.mubr.bf16.mxu0 %v687_v22 }
  0xf3   : > { %v308_v24 = vrot.slane %v307_v23, 4  ;;  %v314_v25 = vsel %vm255_vm0, %v306_v21, 0.0 }
  0xf4   : > { %v315_v26 = vrot.slane %v314_v25, 4 }
  0xf5   : > { %v309_v27 = vadd.f32 %v308_v24, %v307_v23 }
  0xf6   : > { %v316_v28 = vadd.f32 %v315_v26, %v314_v25 }
  0xf7   : > { %v310_v29 = vrot.slane %v309_v27, 2 }
  0xf8   : > { %v317_v30 = vrot.slane %v316_v28, 2 }
  0xf9   : > { %v311_v31 = vadd.f32 %v310_v29, %v309_v27 }
  0xfa   : > { %v318_v32 = vadd.f32 %v317_v30, %v316_v28 }
  0xfb   : > { %v312_v33 = vrot.slane %v311_v31, 1 }
  0xfc   : > { %v319_v34 = vrot.slane %v318_v32, 1 }
  0xfd   : > { %v313_v35 = vadd.f32 %v312_v33, %v311_v31 }
  0xfe   : > { %v320_v36 = vadd.f32 %v319_v34, %v318_v32 }
  0xff   : > { %899 = vrsqrt.f32 %v313_v35  ;;  %vm323_vm2 = vcmp.eq.f32.partialorder %v313_v35, inf  ;;  %v326_v40 = vand.u32 2147483648, %v313_v35  ;;  %vm325_vm3 = vcmp.eq.f32.partialorder %v313_v35, 0.0 }
 0x100   : > { %901 = vrsqrt.f32 %v320_v36  ;;  %vm330_vm4 = vcmp.eq.f32.partialorder %v320_v36, inf  ;;  %v333_v43 = vand.u32 2147483648, %v320_v36  ;;  %vm332_vm5 = vcmp.eq.f32.partialorder %v320_v36, 0.0 }
 0x109   : > { %v900_v37 = vpop.eup %899 }
 0x10a   : > { %v902_v38 = vpop.eup %901  ;;  %v322_v39 = vmul.f32 %v900_v37, %v313_v35 }
 0x10b   : > { %v329_v41 = vmul.f32 %v902_v38, %v320_v36 }
 0x10c   : > { %v324_v42 = vsel %vm323_vm2, %v313_v35, %v322_v39 }
 0x10d   : > { %v327_v44 = vsel %vm325_vm3, %v326_v40, %v324_v42  ;;  %v331_v45 = vsel %vm330_vm4, %v320_v36, %v329_v41 }
 0x10e   : > { %v335_v46 = vmax.f32 %v327_v44, 5e-05  ;;  %v334_v47 = vsel %vm332_vm5, %v333_v43, %v331_v45 }
 0x10f   : > { %v336_v48 = vmax.f32 %v334_v47, 5e-05 }
 0x110   : > { %903 = vrcp.f32 %v335_v46 }
 0x111   : > { %905 = vrcp.f32 %v336_v48 }
 0x11a   : > { %v904_v49 = vpop.eup %903 }
 0x11b   : > { %v906_v50 = vpop.eup %905  ;;  %v338_v51 = vmul.f32 2.4494898, %v904_v49 }
 0x11c   : > { %v340_v52 = vmul.f32 2.4494898, %v906_v50 }
 0x11d   : > { %v341_v53 = vmul.f32 %v338_v51, %v301_v16  ;;  %v343_v54 = vmul.f32 %v338_v51, %v327_v44 }
 0x11e   : > { %v342_v55 = vmul.f32 %v340_v52, %v303_v19  ;;  %v344_v56 = vmul.f32 %v340_v52, %v334_v47 }
 0x11f   : > { %v365_v57 = vpack.c.bf16 %v341_v53, %v341_v53  ;;  %v345_v5 = vmul.f32 %v343_v54, %v343_v54 }
 0x120   : > { %v366_v58 = vpack.c.bf16 %v342_v55, %v342_v55  ;;  %v346_v6 = vmul.f32 %v344_v56, %v344_v56 }
 0x121   : > { %v434_v59 = vsel %vm432_vm6, %v365_v57, 0  ;;  %v1105_v7 = vmul.f32 0.5, %v345_v5 }
 0x122   : > { %851 = vmatprep.subr.msk.bf16.mxu1 %vm432_vm6, %v366_v58  ;;  %v1107_v8 = vmul.f32 0.5, %v346_v6 }
 0x123   : > { %440 = vmatpush1.bf16.msra.mxu1 %v434_v59 }
 0x126   : > { %852 = vmatmul.mubr.msk.bf16.vlgmr.msra.gmra.mrb[0].mxu1 %vm407_vm7, %v891_v60 }
 0x127   : > { %481 = vmatprep.mubr.bf16.mxu1 %v995_v0 }
 0x12e   : > { %853 = vmatmul.mubr.msk.bf16.gmra.mrb[4].mxu1 %vm407_vm7, %v892_v61 }
 0x12f   : > { %491 = vmatprep.mubr.bf16.mxu1 %v995_v0 }
 0x136   : > { %854 = vmatmul.mubr.msk.bf16.gmra.mrb[8].mxu1 %vm407_vm7, %v893_v62 }
 0x137   : > { %501 = vmatprep.mubr.bf16.mxu1 %v995_v0 }
 0x13e   : > { %855 = vmatmul.mubr.msk.bf16.gmra.mrb[12].mxu1 %vm407_vm7, %v894_v63 }
 0x13f   : > { %511 = vmatprep.mubr.bf16.mxu1 %v995_v0 }
 0x146   : > { %856 = vmatmul.mubr.msk.bf16.gmra.mrb[16].mxu1 %vm407_vm7, %v895_v1 }
 0x147   : > { %521 = vmatprep.mubr.bf16.mxu1 %v995_v0 }
 0x14e   : > { %857 = vmatmul.mubr.msk.bf16.gmra.mrb[20].mxu1 %vm407_vm7, %v896_v2 }
 0x14f   : > { %531 = vmatprep.mubr.bf16.mxu1 %v995_v0 }
 0x156   : > { %858 = vmatmul.mubr.msk.bf16.gmra.mrb[24].mxu1 %vm407_vm7, %v897_v3 }
 0x157   : > { %541 = vmatprep.mubr.bf16.mxu1 %v995_v0 }
 0x15e   : > { %859 = vmatmul.mubr.msk.bf16.gmra.mrb[28].mxu1 %vm407_vm7, %v898_v4 }
 0x1f9   : > { %v473_v9 = vpop.f32.mrb[0].mxu1 }
 0x1fa   : > { %v552_v10 = vsub.f32 %v473_v9, %v1105_v7  ;;  %v475_v11 = vpop.f32.mrb[1].mxu1 }
 0x1fb   : > { %v553_v13 = vsub.f32 %v475_v11, %v1107_v8  ;;  %v477_v14 = vpop.f32.mrb[2].mxu1 }
 0x1fc   : > { %v584_v0 = vmul.f32 1.442695, %v552_v10  ;;  %v554_v15 = vsub.f32 %v477_v14, %v1105_v7  ;;  %v479_v16 = vpop.f32.mrb[3].mxu1 }
 0x1fd   : > { %v586_v17 = vmul.f32 1.442695, %v553_v13  ;;  %v555_v18 = vsub.f32 %v479_v16, %v1107_v8 }
 0x1fe   : > { %907 = vpow2.f32 %v584_v0  ;;  %v588_v19 = vmul.f32 1.442695, %v554_v15 }
 0x1ff   : > { %909 = vpow2.f32 %v586_v17  ;;  %v590_v20 = vmul.f32 1.442695, %v555_v18 }
 0x200   : > { %911 = vpow2.f32 %v588_v19 }
 0x201   : > { %913 = vpow2.f32 %v590_v20  ;;  %v483_v21 = vpop.f32.mrb[4].mxu1 }
 0x202   : > { %v556_v22 = vsub.f32 %v483_v21, %v1105_v7  ;;  %v485_v23 = vpop.f32.mrb[5].mxu1 }
 0x203   : > { %v557_v24 = vsub.f32 %v485_v23, %v1107_v8  ;;  %v487_v25 = vpop.f32.mrb[6].mxu1 }
 0x204   : > { %v592_v26 = vmul.f32 1.442695, %v556_v22  ;;  %v558_v27 = vsub.f32 %v487_v25, %v1105_v7  ;;  %v489_v28 = vpop.f32.mrb[7].mxu1 }
 0x205   : > { %v594_v29 = vmul.f32 1.442695, %v557_v24  ;;  %v559_v30 = vsub.f32 %v489_v28, %v1107_v8 }
 0x206   : > { %915 = vpow2.f32 %v592_v26  ;;  %v596_v31 = vmul.f32 1.442695, %v558_v27 }
 0x207   : > { %917 = vpow2.f32 %v594_v29  ;;  %v598_v32 = vmul.f32 1.442695, %v559_v30 }
 0x208   : > { %v908_v33 = vpop.eup %907  ;;  %919 = vpow2.f32 %v596_v31 }
 0x209   : > { %v910_v34 = vpop.eup %909  ;;  %921 = vpow2.f32 %v598_v32  ;;  %v493_v35 = vpop.f32.mrb[8].mxu1  ;;  %v648_v37 = vadd.f32 0.0001, %v908_v33 }
 0x20a   : > { %v912_v36 = vpop.eup %911  ;;  %v560_v38 = vsub.f32 %v493_v35, %v1105_v7  ;;  %v495_v39 = vpop.f32.mrb[9].mxu1  ;;  %v649_v41 = vadd.f32 0.0001, %v910_v34 }
 0x20b   : > { %v914_v40 = vpop.eup %913  ;;  %v650_v42 = vadd.f32 0.0001, %v912_v36  ;;  %v561_v43 = vsub.f32 %v495_v39, %v1107_v8  ;;  %v497_v44 = vpop.f32.mrb[10].mxu1 }
 0x20c   : > { %v651_v45 = vadd.f32 0.0001, %v914_v40  ;;  %v600_v46 = vmul.f32 1.442695, %v560_v38  ;;  %v562_v47 = vsub.f32 %v497_v44, %v1105_v7  ;;  %v499_v48 = vpop.f32.mrb[11].mxu1 }
 0x20d   : > { %v689_v49 = vpack.c.bf16 %v650_v42, %v648_v37  ;;  %v602_v50 = vmul.f32 1.442695, %v561_v43  ;;  %v563_v51 = vsub.f32 %v499_v48, %v1107_v8 }
 0x20e   : > { %923 = vpow2.f32 %v600_v46  ;;  %v604_v52 = vmul.f32 1.442695, %v562_v47  ;;  %v690_v53 = vpack.c.bf16 %v651_v45, %v649_v41 }
 0x20f   : > { %925 = vpow2.f32 %v602_v50  ;;  %v606_v54 = vmul.f32 1.442695, %v563_v51 }
 0x210   : > { %v916_v55 = vpop.eup %915  ;;  %927 = vpow2.f32 %v604_v52  ;;  %705 = vmatprep.subr.bf16.mxu0 %v690_v53 }
 0x211   : > { %v918_v56 = vpop.eup %917  ;;  %929 = vpow2.f32 %v606_v54  ;;  %v503_v57 = vpop.f32.mrb[12].mxu1  ;;  %706 = vmatpush1.bf16.xpose.msra.mxu0 %v689_v49  ;;  %v652_v59 = vadd.f32 0.0001, %v916_v55 }
 0x212   : > { %v920_v58 = vpop.eup %919  ;;  %v564_v60 = vsub.f32 %v503_v57, %v1105_v7  ;;  %v505_v61 = vpop.f32.mrb[13].mxu1  ;;  %v653_v63 = vadd.f32 0.0001, %v918_v56 }
 0x213   : > { %v922_v62 = vpop.eup %921  ;;  %v654_v1 = vadd.f32 0.0001, %v920_v58  ;;  %v565_v2 = vsub.f32 %v505_v61, %v1107_v8  ;;  %v507_v3 = vpop.f32.mrb[14].mxu1 }
 0x214   : > { %v655_v4 = vadd.f32 0.0001, %v922_v62  ;;  %v608_v5 = vmul.f32 1.442695, %v564_v60  ;;  %v566_v6 = vsub.f32 %v507_v3, %v1105_v7  ;;  %v509_v9 = vpop.f32.mrb[15].mxu1 }
 0x215   : > { %v691_v10 = vpack.c.bf16 %v654_v1, %v652_v59  ;;  %v610_v11 = vmul.f32 1.442695, %v565_v2  ;;  %v567_v13 = vsub.f32 %v509_v9, %v1107_v8 }
 0x216   : > { %931 = vpow2.f32 %v608_v5  ;;  %v612_v14 = vmul.f32 1.442695, %v566_v6  ;;  %v692_v0 = vpack.c.bf16 %v655_v4, %v653_v63 }
 0x217   : > { %933 = vpow2.f32 %v610_v11  ;;  %v614_v15 = vmul.f32 1.442695, %v567_v13 }
 0x218   : > { %v924_v16 = vpop.eup %923  ;;  %935 = vpow2.f32 %v612_v14  ;;  %707 = vmatprep.subr.bf16.mxu0 %v692_v0 }
 0x219   : > { %v926_v17 = vpop.eup %925  ;;  %937 = vpow2.f32 %v614_v15  ;;  %v513_v18 = vpop.f32.mrb[16].mxu1  ;;  %708 = vmatpush1.bf16.xpose.msra.mxu0 %v691_v10  ;;  %v656_v20 = vadd.f32 0.0001, %v924_v16 }
 0x21a   : > { %v928_v19 = vpop.eup %927  ;;  %v568_v21 = vsub.f32 %v513_v18, %v1105_v7  ;;  %v515_v22 = vpop.f32.mrb[17].mxu1  ;;  %v657_v24 = vadd.f32 0.0001, %v926_v17 }
 0x21b   : > { %v930_v23 = vpop.eup %929  ;;  %v658_v25 = vadd.f32 0.0001, %v928_v19  ;;  %v569_v26 = vsub.f32 %v515_v22, %v1107_v8  ;;  %v517_v27 = vpop.f32.mrb[18].mxu1 }
 0x21c   : > { %v659_v28 = vadd.f32 0.0001, %v930_v23  ;;  %v616_v29 = vmul.f32 1.442695, %v568_v21  ;;  %v570_v30 = vsub.f32 %v517_v27, %v1105_v7  ;;  %v519_v31 = vpop.f32.mrb[19].mxu1 }
 0x21d   : > { %v693_v32 = vpack.c.bf16 %v658_v25, %v656_v20  ;;  %v618_v33 = vmul.f32 1.442695, %v569_v26  ;;  %v571_v34 = vsub.f32 %v519_v31, %v1107_v8 }
 0x21e   : > { %939 = vpow2.f32 %v616_v29  ;;  %v620_v35 = vmul.f32 1.442695, %v570_v30  ;;  %v694_v36 = vpack.c.bf16 %v659_v28, %v657_v24 }
 0x21f   : > { %941 = vpow2.f32 %v618_v33  ;;  %v622_v37 = vmul.f32 1.442695, %v571_v34 }
 0x220   : > { %v932_v38 = vpop.eup %931  ;;  %943 = vpow2.f32 %v620_v35  ;;  %709 = vmatprep.subr.bf16.mxu0 %v694_v36 }
 0x221   : > { %v934_v39 = vpop.eup %933  ;;  %945 = vpow2.f32 %v622_v37  ;;  %v523_v40 = vpop.f32.mrb[20].mxu1  ;;  %710 = vmatpush1.bf16.xpose.msra.mxu0 %v693_v32  ;;  %v660_v42 = vadd.f32 0.0001, %v932_v38 }
 0x222   : > { %v936_v41 = vpop.eup %935  ;;  %v572_v43 = vsub.f32 %v523_v40, %v1105_v7  ;;  %v525_v44 = vpop.f32.mrb[21].mxu1  ;;  %v661_v46 = vadd.f32 0.0001, %v934_v39 }
 0x223   : > { %v938_v45 = vpop.eup %937  ;;  %v662_v47 = vadd.f32 0.0001, %v936_v41  ;;  %v573_v48 = vsub.f32 %v525_v44, %v1107_v8  ;;  %v527_v49 = vpop.f32.mrb[22].mxu1 }
 0x224   : > { %v663_v50 = vadd.f32 0.0001, %v938_v45  ;;  %v624_v51 = vmul.f32 1.442695, %v572_v43  ;;  %v574_v52 = vsub.f32 %v527_v49, %v1105_v7  ;;  %v529_v53 = vpop.f32.mrb[23].mxu1 }
 0x225   : > { %v695_v54 = vpack.c.bf16 %v662_v47, %v660_v42  ;;  %v626_v55 = vmul.f32 1.442695, %v573_v48  ;;  %v575_v56 = vsub.f32 %v529_v53, %v1107_v8 }
 0x226   : > { %947 = vpow2.f32 %v624_v51  ;;  %v628_v57 = vmul.f32 1.442695, %v574_v52  ;;  %v696_v58 = vpack.c.bf16 %v663_v50, %v661_v46 }
 0x227   : > { %949 = vpow2.f32 %v626_v55  ;;  %v630_v59 = vmul.f32 1.442695, %v575_v56 }
 0x228   : > { %v940_v60 = vpop.eup %939  ;;  %951 = vpow2.f32 %v628_v57  ;;  %711 = vmatprep.subr.bf16.mxu0 %v696_v58 }
 0x229   : > { %v942_v61 = vpop.eup %941  ;;  %953 = vpow2.f32 %v630_v59  ;;  %v533_v62 = vpop.f32.mrb[24].mxu1  ;;  %712 = vmatpush1.bf16.xpose.msra.mxu0 %v695_v54  ;;  %v664_v1 = vadd.f32 0.0001, %v940_v60 }
 0x22a   : > { %v944_v63 = vpop.eup %943  ;;  %v576_v2 = vsub.f32 %v533_v62, %v1105_v7  ;;  %v535_v3 = vpop.f32.mrb[25].mxu1  ;;  %v665_v5 = vadd.f32 0.0001, %v942_v61  ;;  %v680_v61 = vpack.c.bf16 %v1061_v12, %v1061_v12 }
 0x22b   : > { %v946_v4 = vpop.eup %945  ;;  %v666_v6 = vadd.f32 0.0001, %v944_v63  ;;  %v577_v9 = vsub.f32 %v535_v3, %v1107_v8  ;;  %v537_v10 = vpop.f32.mrb[26].mxu1 }
 0x22c   : > { %v667_v11 = vadd.f32 0.0001, %v946_v4  ;;  %v632_v13 = vmul.f32 1.442695, %v576_v2  ;;  %v578_v14 = vsub.f32 %v537_v10, %v1105_v7  ;;  %v539_v0 = vpop.f32.mrb[27].mxu1 }
 0x22d   : > { %v697_v15 = vpack.c.bf16 %v666_v6, %v664_v1  ;;  %v634_v16 = vmul.f32 1.442695, %v577_v9  ;;  %v579_v17 = vsub.f32 %v539_v0, %v1107_v8  ;;  %v684_v62 = vsel %vm255_vm0, %v680_v61, 1065369472 }
 0x22e   : > { %955 = vpow2.f32 %v632_v13  ;;  %v636_v18 = vmul.f32 1.442695, %v578_v14  ;;  %v698_v19 = vpack.c.bf16 %v667_v11, %v665_v5 }
 0x22f   : > { %957 = vpow2.f32 %v634_v16  ;;  %v638_v20 = vmul.f32 1.442695, %v579_v17 }
 0x230   : > { %v948_v21 = vpop.eup %947  ;;  %959 = vpow2.f32 %v636_v18  ;;  %713 = vmatprep.subr.bf16.mxu0 %v698_v19 }
 0x231   : > { %v950_v22 = vpop.eup %949  ;;  %961 = vpow2.f32 %v638_v20  ;;  %v543_v23 = vpop.f32.mrb[28].mxu1  ;;  %714 = vmatpush1.bf16.xpose.msra.mxu0 %v697_v15  ;;  %v668_v25 = vadd.f32 0.0001, %v948_v21 }
 0x232   : > { %v952_v24 = vpop.eup %951  ;;  %v580_v26 = vsub.f32 %v543_v23, %v1105_v7  ;;  %v545_v27 = vpop.f32.mrb[29].mxu1  ;;  %v669_v29 = vadd.f32 0.0001, %v950_v22 }
 0x233   : > { %v954_v28 = vpop.eup %953  ;;  %v670_v30 = vadd.f32 0.0001, %v952_v24  ;;  %v581_v31 = vsub.f32 %v545_v27, %v1107_v8  ;;  %v547_v32 = vpop.f32.mrb[30].mxu1 }
 0x234   : > { %v671_v33 = vadd.f32 0.0001, %v954_v28  ;;  %v640_v34 = vmul.f32 1.442695, %v580_v26  ;;  %v582_v35 = vsub.f32 %v547_v32, %v1105_v7  ;;  %v549_v36 = vpop.f32.mrb[31].mxu1 }
 0x235   : > { %v699_v37 = vpack.c.bf16 %v670_v30, %v668_v25  ;;  %v642_v38 = vmul.f32 1.442695, %v581_v31  ;;  %v583_v39 = vsub.f32 %v549_v36, %v1107_v8 }
 0x236   : > { %963 = vpow2.f32 %v640_v34  ;;  %v644_v40 = vmul.f32 1.442695, %v582_v35  ;;  %v700_v41 = vpack.c.bf16 %v671_v33, %v669_v29 }
 0x237   : > { %965 = vpow2.f32 %v642_v38  ;;  %v646_v42 = vmul.f32 1.442695, %v583_v39 }
 0x238   : > { %v956_v43 = vpop.eup %955  ;;  %967 = vpow2.f32 %v644_v40  ;;  %715 = vmatprep.subr.bf16.mxu0 %v700_v41 }
 0x239   : > { %v958_v44 = vpop.eup %957  ;;  %969 = vpow2.f32 %v646_v42  ;;  %716 = vmatpush1.bf16.xpose.msra.mxu0 %v699_v37  ;;  %v672_v47 = vadd.f32 0.0001, %v956_v43 }
 0x23a   : > { %v960_v45 = vpop.eup %959  ;;  %v673_v48 = vadd.f32 0.0001, %v958_v44 }
 0x23b   : > { %v962_v46 = vpop.eup %961  ;;  %v674_v7 = vadd.f32 0.0001, %v960_v45 }
 0x23c   : > { %v675_v49 = vadd.f32 0.0001, %v962_v46 }
 0x23d   : > { %v701_v50 = vpack.c.bf16 %v674_v7, %v672_v47 }
 0x23e   : > { %v702_v51 = vpack.c.bf16 %v675_v49, %v673_v48 }
 0x240   : > { %v964_v8 = vpop.eup %963  ;;  %717 = vmatprep.subr.bf16.mxu0 %v702_v51 }
 0x241   : > { %v966_v52 = vpop.eup %965  ;;  %718 = vmatpush1.bf16.xpose.msra.mxu0 %v701_v50  ;;  %v676_v55 = vadd.f32 0.0001, %v964_v8 }
 0x242   : > { %v968_v53 = vpop.eup %967  ;;  %v677_v57 = vadd.f32 0.0001, %v966_v52 }
 0x243   : > { %v970_v54 = vpop.eup %969  ;;  %v678_v56 = vadd.f32 0.0001, %v968_v53 }
 0x244   : > { %v679_v58 = vadd.f32 0.0001, %v970_v54 }
 0x245   : > { %v703_v59 = vpack.c.bf16 %v678_v56, %v676_v55 }
 0x246   : > { %v704_v60 = vpack.c.bf16 %v679_v58, %v677_v57 }
 0x248   : > { %719 = vmatprep.subr.bf16.mxu0 %v704_v60 }
 0x249   : > { %720 = vmatpush1.bf16.xpose.msra.mxu0 %v703_v59 }
 0x250   : > { %738 = vmatmul.mubr.bf16.vlgmr.msra.gmra.mrb[4].mxu0 %v684_v62 }
 0x323   : > { %v739_v63 = vpop.f32.mrb[4].mxu0 }
 0x324   : > { %750 = vst [vmem:[%s225_s26] sm:$0xff] %v739_v63  ;;  %v741_v1 = vpop.f32.mrb[5].mxu0 }
 0x325   : > { %v742_v2 = vpop.f32.mrb[6].mxu0 }
 0x326   : > { %751 = vst [vmem:[%s225_s26 + $0x8] sm:$0x1] %v742_v2  ;;  %v744_v3 = vpop.f32.mrb[7].mxu0 }
 0x327 PF: > { %s14_s17 = sadd.s32 1, %s993_s17   ;;  %s1163_s15 = smov %s989_s16 }
 0x328   : > { %p11_p5 = scmp.ge.s32.totalorder %s14_s17, 4   ;;  %s1164_s16 = smov %s1166_s18 }
 0x32a   :  { %13 = sbr.rel (!%p11_p5) target bundleno = 2 (0x2), region = 74 }

</bundles_post_ra>
